<compile_context>
chip_gen: v7x
topology: tpu7x:2x2x1
jax: 0.10.0
libtpu: 0.0.40
codegen_flags: <defaults>
</compile_context>

<pallas_src>
import math

import jax
import jax.numpy as jnp
from jax.experimental import pallas as pl
from jax.experimental.pallas import tpu as pltpu

_BN_EPS = 1e-5


def _vmem_spec():
    # Whole array resident in VMEM; single ungridded kernel invocation (the
    # problem is tiny: one (8,128) output vreg).
    return pl.BlockSpec(memory_space=pltpu.MemorySpace.VMEM)


def _factorized_reduce_kernel(x_ref, w1_ref, w2_ref, g_ref, b_ref, out_ref):
    """Fused dual strided 1x1 conv + per-half training-mode BatchNorm.

    x_ref  : (2*C_in, M)  ReLU'd activations; rows [0, C_in) are the even
             (2i, 2j) taps for conv_1, rows [C_in, 2*C_in) the odd (2i+1, 2j+1)
             taps for conv_2.  M = N*Ho*Wo (lane-dense minor dim).
    w1_ref : (C_half, C_in)   conv_1 weight
    w2_ref : (C_half, C_in)   conv_2 weight
    g_ref  : (C_out, 1)       BN gamma
    b_ref  : (C_out, 1)       BN beta
    out_ref: (C_out, M)       lane-dense output (channels [0,C_half) = branch 1,
                              [C_half, C_out) = branch 2, i.e. the torch.cat order)
    """
    _, m = out_ref.shape
    c_half, c_in = w1_ref.shape
    inv_m = 1.0 / m

    # Load activations and weights once (hoisted out of the unrolled loop).
    # TODO(synk): at large M, replace the in-register row broadcasts below with
    # stride-0 sublane-broadcast loads (x_ref[pl.ds(ci, c_half, stride=0), :])
    # to move the broadcast onto the otherwise-idle vld slot.
    x = x_ref[...]                                     # (2*C_in, M)
    w1 = w1_ref[...]                                   # (C_half, C_in)
    w2 = w2_ref[...]
    g = g_ref[...]                                     # (C_out, 1)
    b = b_ref[...]

    # 1x1 conv == channel contraction, unrolled as C_in broadcast FMAs per
    # branch over (C_half, M) tiles (C_in is tiny -> skip the MXU).
    acc1 = w1[:, 0:1] * x[0:1, :]                      # (C_half, M)
    acc2 = w2[:, 0:1] * x[c_in:c_in + 1, :]
    for ci in range(1, c_in):
        acc1 = acc1 + w1[:, ci:ci + 1] * x[ci:ci + 1, :]
        acc2 = acc2 + w2[:, ci:ci + 1] * x[c_in + ci:c_in + ci + 1, :]

    # BatchNorm2d (training mode): per-channel stats over the M = N*Ho*Wo axis.
    # Stats are per-channel, so each branch is normalized independently (no
    # concat needed); the affine is folded into a single scale/shift.
    def _bn(acc, gamma_h, beta_h):
        mean = jnp.sum(acc, axis=1, keepdims=True) * inv_m          # (C_half, 1)
        ex2 = jnp.sum(acc * acc, axis=1, keepdims=True) * inv_m
        var = jnp.maximum(ex2 - mean * mean, 0.0)                    # biased var
        scale = gamma_h * jax.lax.rsqrt(var + _BN_EPS)
        shift = beta_h - mean * scale
        return acc * scale + shift

    out_ref[0:c_half, :] = _bn(acc1, g[0:c_half, :], b[0:c_half, :])
    out_ref[c_half:2 * c_half, :] = _bn(acc2, g[c_half:2 * c_half, :],
                                        b[c_half:2 * c_half, :])


def factorized_reduce_lane_dense(x_nchw, w1, w2, gamma, beta):
    """Fused forward; returns the kernel's natural lane-dense (C_out, N*Ho*Wo)
    layout (column index = n*Ho*Wo + i*Wo + j).  Consumers that can index this
    layout directly avoid an output-sized HBM round trip."""
    n, c_in, h, w_sp = x_nchw.shape
    assert h % 2 == 0 and w_sp % 2 == 0, "FactorizedReduce needs even H, W"
    ho, wo = h // 2, w_sp // 2
    m = n * ho * wo
    c_half = w1.shape[0]
    c_out = 2 * c_half

    # One copy fusion over x: ReLU + both stride-2 taps + lane-dense repack,
    # producing a single stacked (2*C_in, M) array (x read from HBM once).
    x = jnp.maximum(x_nchw.astype(jnp.float32), 0.0)
    xr = x.reshape(n, c_in, ho, 2, wo, 2)
    x_stack = jnp.stack([xr[:, :, :, 0, :, 0],       # conv_1 taps (2i,   2j)
                         xr[:, :, :, 1, :, 1]],      # conv_2 taps (2i+1, 2j+1)
                        axis=0)                      # (2, N, C_in, Ho, Wo)
    x_stack = jnp.transpose(x_stack, (0, 2, 1, 3, 4)).reshape(2 * c_in, m)

    # TODO(synk): for large M add an "arbitrary" grid over lane-dense M blocks
    # with scratch-accumulated sum/sumsq (two-pass BN), needed under the v7x
    # 64 MiB VMEM ceiling; at M=128 the ungridded whole-resident call is fastest.
    # TODO(synk): PyTorch BN also updates running_mean/running_var in training
    # mode; only the normalized output is produced here.
    out_km = pl.pallas_call(
        _factorized_reduce_kernel,
        out_shape=jax.ShapeDtypeStruct((c_out, m), jnp.float32),
        in_specs=[_vmem_spec()] * 5,
        out_specs=_vmem_spec(),
    )(x_stack,
      w1.astype(jnp.float32),
      w2.astype(jnp.float32),
      gamma.reshape(c_out, 1).astype(jnp.float32),
      beta.reshape(c_out, 1).astype(jnp.float32))
    return out_km


def factorized_reduce_forward(x_nchw, w1, w2, gamma, beta):
    """Module-parity wrapper: returns (N, C_out, H//2, W//2) NCHW.

    The final unpack is a separate XLA copy; prefer consuming the lane-dense
    layout from factorized_reduce_lane_dense when the downstream op allows it.
    """
    n, c_in, h, w_sp = x_nchw.shape
    ho, wo = h // 2, w_sp // 2
    c_out = 2 * w1.shape[0]
    out_km = factorized_reduce_lane_dense(x_nchw, w1, w2, gamma, beta)
    return jnp.transpose(out_km.reshape(c_out, n, ho, wo), (1, 0, 2, 3))


def _reference_forward(x, w1, w2, gamma, beta):
    """Pure-JAX reference mirroring the PyTorch module (training-mode BN)."""
    xr = jnp.maximum(x, 0.0)
    xe = xr[:, :, 0::2, 0::2]
    xo = xr[:, :, 1::2, 1::2]
    o1 = jnp.einsum("oc,nchw->nohw", w1, xe)
    o2 = jnp.einsum("oc,nchw->nohw", w2, xo)
    y = jnp.concatenate([o1, o2], axis=1)
    mean = jnp.mean(y, axis=(0, 2, 3), keepdims=True)
    var = jnp.mean((y - mean) ** 2, axis=(0, 2, 3), keepdims=True)
    y_hat = (y - mean) * jax.lax.rsqrt(var + _BN_EPS)
    return y_hat * gamma.reshape(1, -1, 1, 1) + beta.reshape(1, -1, 1, 1)


if __name__ == "__main__":
    n, c_in, h, w_sp = 2, 4, 16, 16
    c_out = 8                                   # must be even

    key = jax.random.PRNGKey(0)
    kx, k1, k2 = jax.random.split(key, 3)
    x = jax.random.normal(kx, (n, c_in, h, w_sp), jnp.float32)       # NCHW
    scale = 1.0 / math.sqrt(c_in)
    w1 = jax.random.normal(k1, (c_out // 2, c_in), jnp.float32) * scale
    w2 = jax.random.normal(k2, (c_out // 2, c_in), jnp.float32) * scale
    gamma = jnp.ones((c_out,), jnp.float32)     # PyTorch BN default init
    beta = jnp.zeros((c_out,), jnp.float32)

    fwd = jax.jit(lambda xx: factorized_reduce_forward(xx, w1, w2, gamma, beta))
    out = fwd(x)
    jax.block_until_ready(out)

    assert out.shape == (n, c_out, h // 2, w_sp // 2), out.shape

    ref = _reference_forward(x, w1, w2, gamma, beta)
    err = float(jnp.max(jnp.abs(out - ref)))
    assert err < 2e-4, f"mismatch vs reference: max abs err = {err}"

    print("KERNEL_OK")
</pallas_src>

<mosaic_0001>
module attributes {stable_mosaic.version = 11 : i64} {
  func.func @_factorized_reduce_kernel(%arg0: memref<8x128xf32, #tpu.memory_space<vmem>>, %arg1: memref<4x4xf32, #tpu.memory_space<vmem>>, %arg2: memref<4x4xf32, #tpu.memory_space<vmem>>, %arg3: memref<8x1xf32, #tpu.memory_space<vmem>>, %arg4: memref<8x1xf32, #tpu.memory_space<vmem>>, %arg5: memref<8x128xf32, #tpu.memory_space<vmem>>) attributes {dimension_semantics = [], scalar_prefetch = 0 : i64, scratch_operands = 0 : i64, tpu.core_type = #tpu.core_type<tc>} {
    %c0 = arith.constant 0 : index
    %c0_0 = arith.constant 0 : index
    %0 = vector.load %arg0[%c0, %c0_0] : memref<8x128xf32, #tpu.memory_space<vmem>>, vector<8x128xf32>
    %c0_1 = arith.constant 0 : index
    %c0_2 = arith.constant 0 : index
    %1 = vector.load %arg1[%c0_1, %c0_2] : memref<4x4xf32, #tpu.memory_space<vmem>>, vector<4x4xf32>
    %c0_3 = arith.constant 0 : index
    %c0_4 = arith.constant 0 : index
    %2 = vector.load %arg2[%c0_3, %c0_4] : memref<4x4xf32, #tpu.memory_space<vmem>>, vector<4x4xf32>
    %c0_5 = arith.constant 0 : index
    %c0_6 = arith.constant 0 : index
    %3 = vector.load %arg3[%c0_5, %c0_6] : memref<8x1xf32, #tpu.memory_space<vmem>>, vector<8x1xf32>
    %c0_7 = arith.constant 0 : index
    %c0_8 = arith.constant 0 : index
    %4 = vector.load %arg4[%c0_7, %c0_8] : memref<8x1xf32, #tpu.memory_space<vmem>>, vector<8x1xf32>
    %5 = vector.extract_strided_slice %1 {offsets = [0, 0], sizes = [4, 1], strides = [1, 1]} : vector<4x4xf32> to vector<4x1xf32>
    %6 = vector.extract_strided_slice %0 {offsets = [0, 0], sizes = [1, 128], strides = [1, 1]} : vector<8x128xf32> to vector<1x128xf32>
    %7 = vector.broadcast %5 : vector<4x1xf32> to vector<4x128xf32>
    %8 = vector.broadcast %6 : vector<1x128xf32> to vector<4x128xf32>
    %9 = arith.mulf %7, %8 : vector<4x128xf32>
    %10 = vector.extract_strided_slice %2 {offsets = [0, 0], sizes = [4, 1], strides = [1, 1]} : vector<4x4xf32> to vector<4x1xf32>
    %11 = vector.extract_strided_slice %0 {offsets = [4, 0], sizes = [1, 128], strides = [1, 1]} : vector<8x128xf32> to vector<1x128xf32>
    %12 = vector.broadcast %10 : vector<4x1xf32> to vector<4x128xf32>
    %13 = vector.broadcast %11 : vector<1x128xf32> to vector<4x128xf32>
    %14 = arith.mulf %12, %13 : vector<4x128xf32>
    %15 = vector.extract_strided_slice %1 {offsets = [0, 1], sizes = [4, 1], strides = [1, 1]} : vector<4x4xf32> to vector<4x1xf32>
    %16 = vector.extract_strided_slice %0 {offsets = [1, 0], sizes = [1, 128], strides = [1, 1]} : vector<8x128xf32> to vector<1x128xf32>
    %17 = vector.broadcast %15 : vector<4x1xf32> to vector<4x128xf32>
    %18 = vector.broadcast %16 : vector<1x128xf32> to vector<4x128xf32>
    %19 = arith.mulf %17, %18 : vector<4x128xf32>
    %20 = arith.addf %9, %19 : vector<4x128xf32>
    %21 = vector.extract_strided_slice %2 {offsets = [0, 1], sizes = [4, 1], strides = [1, 1]} : vector<4x4xf32> to vector<4x1xf32>
    %22 = vector.extract_strided_slice %0 {offsets = [5, 0], sizes = [1, 128], strides = [1, 1]} : vector<8x128xf32> to vector<1x128xf32>
    %23 = vector.broadcast %21 : vector<4x1xf32> to vector<4x128xf32>
    %24 = vector.broadcast %22 : vector<1x128xf32> to vector<4x128xf32>
    %25 = arith.mulf %23, %24 : vector<4x128xf32>
    %26 = arith.addf %14, %25 : vector<4x128xf32>
    %27 = vector.extract_strided_slice %1 {offsets = [0, 2], sizes = [4, 1], strides = [1, 1]} : vector<4x4xf32> to vector<4x1xf32>
    %28 = vector.extract_strided_slice %0 {offsets = [2, 0], sizes = [1, 128], strides = [1, 1]} : vector<8x128xf32> to vector<1x128xf32>
    %29 = vector.broadcast %27 : vector<4x1xf32> to vector<4x128xf32>
    %30 = vector.broadcast %28 : vector<1x128xf32> to vector<4x128xf32>
    %31 = arith.mulf %29, %30 : vector<4x128xf32>
    %32 = arith.addf %20, %31 : vector<4x128xf32>
    %33 = vector.extract_strided_slice %2 {offsets = [0, 2], sizes = [4, 1], strides = [1, 1]} : vector<4x4xf32> to vector<4x1xf32>
    %34 = vector.extract_strided_slice %0 {offsets = [6, 0], sizes = [1, 128], strides = [1, 1]} : vector<8x128xf32> to vector<1x128xf32>
    %35 = vector.broadcast %33 : vector<4x1xf32> to vector<4x128xf32>
    %36 = vector.broadcast %34 : vector<1x128xf32> to vector<4x128xf32>
    %37 = arith.mulf %35, %36 : vector<4x128xf32>
    %38 = arith.addf %26, %37 : vector<4x128xf32>
    %39 = vector.extract_strided_slice %1 {offsets = [0, 3], sizes = [4, 1], strides = [1, 1]} : vector<4x4xf32> to vector<4x1xf32>
    %40 = vector.extract_strided_slice %0 {offsets = [3, 0], sizes = [1, 128], strides = [1, 1]} : vector<8x128xf32> to vector<1x128xf32>
    %41 = vector.broadcast %39 : vector<4x1xf32> to vector<4x128xf32>
    %42 = vector.broadcast %40 : vector<1x128xf32> to vector<4x128xf32>
    %43 = arith.mulf %41, %42 : vector<4x128xf32>
    %44 = arith.addf %32, %43 : vector<4x128xf32>
    %45 = vector.extract_strided_slice %2 {offsets = [0, 3], sizes = [4, 1], strides = [1, 1]} : vector<4x4xf32> to vector<4x1xf32>
    %46 = vector.extract_strided_slice %0 {offsets = [7, 0], sizes = [1, 128], strides = [1, 1]} : vector<8x128xf32> to vector<1x128xf32>
    %47 = vector.broadcast %45 : vector<4x1xf32> to vector<4x128xf32>
    %48 = vector.broadcast %46 : vector<1x128xf32> to vector<4x128xf32>
    %49 = arith.mulf %47, %48 : vector<4x128xf32>
    %50 = arith.addf %38, %49 : vector<4x128xf32>
    %51 = vector.extract_strided_slice %3 {offsets = [0, 0], sizes = [4, 1], strides = [1, 1]} : vector<8x1xf32> to vector<4x1xf32>
    %52 = vector.extract_strided_slice %4 {offsets = [0, 0], sizes = [4, 1], strides = [1, 1]} : vector<8x1xf32> to vector<4x1xf32>
    %cst = arith.constant dense<0.000000e+00> : vector<4xf32>
    %53 = vector.multi_reduction <add>, %44, %cst [1] : vector<4x128xf32> to vector<4xf32>
    %54 = vector.shape_cast %53 : vector<4xf32> to vector<4x1xf32>
    %cst_9 = arith.constant 7.812500e-03 : f32
    %55 = vector.broadcast %cst_9 : f32 to vector<4x1xf32>
    %56 = arith.mulf %54, %55 : vector<4x1xf32>
    %57 = arith.mulf %44, %44 : vector<4x128xf32>
    %cst_10 = arith.constant dense<0.000000e+00> : vector<4xf32>
    %58 = vector.multi_reduction <add>, %57, %cst_10 [1] : vector<4x128xf32> to vector<4xf32>
    %59 = vector.shape_cast %58 : vector<4xf32> to vector<4x1xf32>
    %cst_11 = arith.constant 7.812500e-03 : f32
    %60 = vector.broadcast %cst_11 : f32 to vector<4x1xf32>
    %61 = arith.mulf %59, %60 : vector<4x1xf32>
    %62 = arith.mulf %56, %56 : vector<4x1xf32>
    %63 = arith.subf %61, %62 : vector<4x1xf32>
    %cst_12 = arith.constant 0.000000e+00 : f32
    %64 = vector.broadcast %cst_12 : f32 to vector<4x1xf32>
    %65 = arith.maximumf %63, %64 : vector<4x1xf32>
    %cst_13 = arith.constant 9.99999974E-6 : f32
    %66 = vector.broadcast %cst_13 : f32 to vector<4x1xf32>
    %67 = arith.addf %65, %66 : vector<4x1xf32>
    %68 = math.rsqrt %67 : vector<4x1xf32>
    %69 = arith.mulf %51, %68 : vector<4x1xf32>
    %70 = arith.mulf %56, %69 : vector<4x1xf32>
    %71 = arith.subf %52, %70 : vector<4x1xf32>
    %72 = vector.broadcast %69 : vector<4x1xf32> to vector<4x128xf32>
    %73 = arith.mulf %44, %72 : vector<4x128xf32>
    %74 = vector.broadcast %71 : vector<4x1xf32> to vector<4x128xf32>
    %75 = arith.addf %73, %74 : vector<4x128xf32>
    %c0_14 = arith.constant 0 : index
    %c0_15 = arith.constant 0 : index
    %76 = vector.load %arg5[%c0_14, %c0_15] : memref<8x128xf32, #tpu.memory_space<vmem>>, vector<4x128xf32>
    tpu.vector_store %arg5[%c0_14, %c0_15], %75 {strides = array<i32>} : memref<8x128xf32, #tpu.memory_space<vmem>>, vector<4x128xf32>,
    %77 = vector.extract_strided_slice %3 {offsets = [4, 0], sizes = [4, 1], strides = [1, 1]} : vector<8x1xf32> to vector<4x1xf32>
    %78 = vector.extract_strided_slice %4 {offsets = [4, 0], sizes = [4, 1], strides = [1, 1]} : vector<8x1xf32> to vector<4x1xf32>
    %cst_16 = arith.constant dense<0.000000e+00> : vector<4xf32>
    %79 = vector.multi_reduction <add>, %50, %cst_16 [1] : vector<4x128xf32> to vector<4xf32>
    %80 = vector.shape_cast %79 : vector<4xf32> to vector<4x1xf32>
    %cst_17 = arith.constant 7.812500e-03 : f32
    %81 = vector.broadcast %cst_17 : f32 to vector<4x1xf32>
    %82 = arith.mulf %80, %81 : vector<4x1xf32>
    %83 = arith.mulf %50, %50 : vector<4x128xf32>
    %cst_18 = arith.constant dense<0.000000e+00> : vector<4xf32>
    %84 = vector.multi_reduction <add>, %83, %cst_18 [1] : vector<4x128xf32> to vector<4xf32>
    %85 = vector.shape_cast %84 : vector<4xf32> to vector<4x1xf32>
    %cst_19 = arith.constant 7.812500e-03 : f32
    %86 = vector.broadcast %cst_19 : f32 to vector<4x1xf32>
    %87 = arith.mulf %85, %86 : vector<4x1xf32>
    %88 = arith.mulf %82, %82 : vector<4x1xf32>
    %89 = arith.subf %87, %88 : vector<4x1xf32>
    %cst_20 = arith.constant 0.000000e+00 : f32
    %90 = vector.broadcast %cst_20 : f32 to vector<4x1xf32>
    %91 = arith.maximumf %89, %90 : vector<4x1xf32>
    %cst_21 = arith.constant 9.99999974E-6 : f32
    %92 = vector.broadcast %cst_21 : f32 to vector<4x1xf32>
    %93 = arith.addf %91, %92 : vector<4x1xf32>
    %94 = math.rsqrt %93 : vector<4x1xf32>
    %95 = arith.mulf %77, %94 : vector<4x1xf32>
    %96 = arith.mulf %82, %95 : vector<4x1xf32>
    %97 = arith.subf %78, %96 : vector<4x1xf32>
    %98 = vector.broadcast %95 : vector<4x1xf32> to vector<4x128xf32>
    %99 = arith.mulf %50, %98 : vector<4x128xf32>
    %100 = vector.broadcast %97 : vector<4x1xf32> to vector<4x128xf32>
    %101 = arith.addf %99, %100 : vector<4x128xf32>
    %c4 = arith.constant 4 : index
    %c0_22 = arith.constant 0 : index
    %102 = vector.load %arg5[%c4, %c0_22] : memref<8x128xf32, #tpu.memory_space<vmem>>, vector<4x128xf32>
    tpu.vector_store %arg5[%c4, %c0_22], %101 {strides = array<i32>} : memref<8x128xf32, #tpu.memory_space<vmem>>, vector<4x128xf32>,
    return
  }
}

</mosaic_0001>

<bundles_post_ra>
// kernel: _lambda_.1
= control target key start
LH: loop header
LB: loop body
LE: loop exit
PB: predicated region body
PF: predicated region fallthrough
CT: control target
= control target key end

     0   :  { %v197_v0 = vmov 2   ;;  %v198_v1 = vmov 0   ;;  %v199_v3 = vmov 3   ;;  %v200_v4 = vmov 1   ;;  %s256_s2 = inlined_call_operand.vmem [shape: f32[4,4], index: 2, kind: input, shape index: {}]   ;;  %s257_s1 = inlined_call_operand.vmem [shape: f32[4,4], index: 1, kind: input, shape index: {}]   ;;  %s258_s0 = inlined_call_operand.vmem [shape: f32[8,128], index: 0, kind: input, shape index: {}]   ;;  %s259_s3 = inlined_call_operand.vmem [shape: f32[8,1], index: 3, kind: input, shape index: {}]   ;;  %s260_s4 = inlined_call_operand.vmem [shape: f32[8,1], index: 4, kind: input, shape index: {}]   ;;  %s261_s5 = inlined_call_operand.vmem [shape: f32[8,128], index: 5, kind: output, shape index: {}]  }
   0x1   :  { %186 = vset.pattern.permute.xlu1 %v197_v0  ;;  %184 = vset.pattern.permute.xlu0 %v198_v1  ;;  %v22_v2 = vld [vmem:[%s256_s2] sm:$0xf]  ;;  %v30_v6 = vlaneseq  ;;  %vm105_vm0 = vcmask 1043456  }
   0x2   :  { %76 = vperm.xlu1 %186, %v22_v2   ;;  %37 = vperm.xlu0 %184, %v22_v2   ;;  %v21_v5 = vld [vmem:[%s257_s1] sm:$0xf] }
   0x3   :  { %v31_v7 = vshrl.u32 %v30_v6, 7  ;;  %v20_v10 = vld [vmem:[%s258_s0] sm:$0xff] }
   0x4   :  { %v23_v6 = vld [vmem:[%s259_s3] sm:$0xff] }
   0x5   :  { %v42_v8 = vsub.s32 4, %v31_v7  ;;  %v61_v9 = vsub.s32 5, %v31_v7  ;;  %v81_v12 = vsub.s32 6, %v31_v7  ;;  %v101_v16 = vsub.s32 7, %v31_v7 }
   0x6   :  { %187 = vset.pattern.permute.xlu1 %v199_v3  ;;  %185 = vset.pattern.permute.xlu0 %v200_v4  ;;  %v51_v17 = vsub.s32 1, %v31_v7  ;;  %v32_v19 = vsub.s32 0, %v31_v7  ;;  %v71_v26 = vsub.s32 2, %v31_v7  ;;  %v91_v30 = vsub.s32 3, %v31_v7 }
   0x7   :  { %96 = vperm.xlu1 %187, %v22_v2   ;;  %56 = vperm.xlu0 %185, %v22_v2   ;;  %v43_v14 = vrot.slane %v20_v10, %v42_v8  ;;  %v62_v15 = vrot.slane %v20_v10, %v61_v9  ;;  %v82_v18 = vrot.slane %v20_v10, %v81_v12  ;;  %v24_v12 = vld [vmem:[%s260_s4] sm:$0xff] }
   0x8   :  { %v102_v24 = vrot.slane %v20_v10, %v101_v16  ;;  %v52_v25 = vrot.slane %v20_v10, %v51_v17  ;;  %v33_v29 = vrot.slane %v20_v10, %v32_v19  ;;  %v72_v35 = vrot.slane %v20_v10, %v71_v26 }
   0x9   :  { %v92_v39 = vrot.slane %v20_v10, %v91_v30 }
   0xb   :  { %188 = vset.pattern.permute.xlu1 %v198_v1  ;;  %46 = vperm.xlu0 %185, %v21_v5  }
   0xc   :  { %27 = vperm.xlu1 %188, %v21_v5  }
   0xf   :  { %190 = vset.pattern.permute.xlu0 %v199_v3 }
  0x10   :  { %189 = vset.pattern.permute.xlu1 %v197_v0  ;;  %86 = vperm.xlu0 %190, %v21_v5  }
  0x11   :  { %66 = vperm.xlu1 %189, %v21_v5  }
  0x14   :  { %192 = vset.pattern.permute.xlu0 %v198_v1 }
  0x15   :  { %191 = vset.pattern.permute.xlu1 %v198_v1 }
  0x81   :  { %v38_v11 = vpop.permute.xlu0 %37  ;;  %v77_v13 = vpop.permute.xlu1 %76 }
  0x82   :  { %v44_v22 = vmul.f32 %v43_v14, %v38_v11  ;;  %v83_v27 = vmul.f32 %v82_v18, %v77_v13 }
  0x86   :  { %v57_v20 = vpop.permute.xlu0 %56  ;;  %v97_v21 = vpop.permute.xlu1 %96 }
  0x87   :  { %v63_v23 = vmul.f32 %v62_v15, %v57_v20  ;;  %v103_v33 = vmul.f32 %v102_v24, %v97_v21 }
  0x89   :  { %v64_v28 = vadd.f32 %v63_v23, %v44_v22 }
  0x8a   :  { %v47_v31 = vpop.permute.xlu0 %46 }
  0x8b   :  { %v84_v32 = vadd.f32 %v83_v27, %v64_v28  ;;  %v28_v34 = vpop.permute.xlu1 %27  ;;  %v53_v37 = vmul.f32 %v52_v25, %v47_v31 }
  0x8c   :  { %v34_v38 = vmul.f32 %v33_v29, %v28_v34 }
  0x8d   :  { %v104_v36 = vadd.f32 %v103_v33, %v84_v32 }
  0x8e   :  { %v54_v44 = vadd.f32 %v53_v37, %v34_v38 }
  0x8f   :  { %v136_v40 = vsel %vm105_vm0, %v104_v36, 0.0  ;;  %v87_v41 = vpop.permute.xlu0 %86  ;;  %v140_v42 = vmul.f32 %v104_v36, %v104_v36 }
  0x90   :  { %v67_v43 = vpop.permute.xlu1 %66  ;;  %137 = vadd.xlane.f32.xlu1 %v136_v40  ;;  %v93_v46 = vmul.f32 %v92_v39, %v87_v41 }
  0x91   :  { %v73_v45 = vmul.f32 %v72_v35, %v67_v43  ;;  %v141_v47 = vsel %vm105_vm0, %v140_v42, 0.0 }
  0x92   :  { %142 = vadd.xlane.f32.xlu0 %v141_v47 }
  0x93   :  { %v74_v48 = vadd.f32 %v73_v45, %v54_v44 }
  0x95   :  { %v94_v49 = vadd.f32 %v93_v46, %v74_v48 }
  0x97   :  { %v106_v50 = vsel %vm105_vm0, %v94_v49, 0.0  ;;  %v110_v51 = vmul.f32 %v94_v49, %v94_v49 }
  0x98   :  { %107 = vadd.xlane.f32.xlu1 %v106_v50 }
  0x99   :  { %v111_v52 = vsel %vm105_vm0, %v110_v51, 0.0 }
  0x9a   :  { %112 = vadd.xlane.f32.xlu0 %v111_v52 }
 0x11d   :  { %v138_v53 = vpop.xlane.xlu1 %137 }
 0x11e   :  { %v139_v54 = vmul.f32 0.0078125, %v138_v53 }
 0x11f   :  { %v143_v55 = vpop.xlane.xlu0 %142 }
 0x120   :  { %v145_v56 = vmul.f32 %v139_v54, %v139_v54  ;;  %v144_v57 = vmul.f32 0.0078125, %v143_v55 }
 0x122   :  { %v146_v58 = vsub.f32 %v144_v57, %v145_v56 }
 0x124   :  { %v147_v59 = vmax.f32 %v146_v58, 0.0 }
 0x125   :  { %v108_v60 = vpop.xlane.xlu1 %107 }
 0x126   :  { %v148_v61 = vadd.f32 1e-05, %v147_v59  ;;  %v109_v62 = vmul.f32 0.0078125, %v108_v60 }
 0x127   :  { %v113_v63 = vpop.xlane.xlu0 %112 }
 0x128   :  { %193 = vrsqrt.f32 %v148_v61  ;;  %v115_v0 = vmul.f32 %v109_v62, %v109_v62  ;;  %v114_v1 = vmul.f32 0.0078125, %v113_v63 }
 0x12a   :  { %v116_v2 = vsub.f32 %v114_v1, %v115_v0 }
 0x12c   :  { %v117_v3 = vmax.f32 %v116_v2, 0.0 }
 0x12e   :  { %v118_v4 = vadd.f32 1e-05, %v117_v3 }
 0x130   :  { %195 = vrsqrt.f32 %v118_v4 }
 0x132   :  { %v194_v5 = vpop.eup %193 }
 0x133   :  { %v151_v7 = vrot.slane %v194_v5, 4 }
 0x135   :  { %v153_v8 = vmul.f32 %v151_v7, %v23_v6 }
 0x137   :  { %v155_v9 = vrot.slane %v153_v8, 4  ;;  %163 = vperm.xlu1 %191, %v153_v8  }
 0x139   :  { %v157_v10 = vmul.f32 %v155_v9, %v139_v54 }
 0x13a   :  { %v196_v11 = vpop.eup %195 }
 0x13b   :  { %v120_v13 = vmul.f32 %v196_v11, %v23_v6  ;;  %v159_v14 = vrot.slane %v157_v10, 4 }
 0x13d   :  { %125 = vperm.xlu0 %192, %v120_v13   ;;  %v161_v15 = vsub.f32 %v24_v12, %v159_v14  ;;  %v121_v16 = vmul.f32 %v120_v13, %v109_v62 }
 0x13f   :  { %170 = vperm.xlu1 %191, %v161_v15   ;;  %v122_v17 = vsub.f32 %v24_v12, %v121_v16 }
 0x143   :  { %131 = vperm.xlu1 %191, %v122_v17  }
 0x1b6   :  { %v164_v18 = vpop.permute.xlu1 %163 }
 0x1b7   :  { %v165_v19 = vrot.slane %v164_v18, 4 }
 0x1b9   :  { %v167_v22 = vmul.f32 %v165_v19, %v104_v36 }
 0x1bc   :  { %v126_v20 = vpop.permute.xlu0 %125 }
 0x1bd   :  { %v128_v24 = vmul.f32 %v126_v20, %v94_v49 }
 0x1be   :  { %v171_v21 = vpop.permute.xlu1 %170 }
 0x1bf   :  { %v172_v23 = vrot.slane %v171_v21, 4 }
 0x1c1   :  { %v174_v25 = vadd.f32 %v172_v23, %v167_v22 }
 0x1c2   :  { %v132_v26 = vpop.permute.xlu1 %131 }
 0x1c3   :  { %175 = vst [vmem:[%s261_s5 + $0x4] sm:$0xf] %v174_v25  ;;  %v134_v27 = vadd.f32 %v132_v26, %v128_v24 }
 0x1c5   :  { %135 = vst [vmem:[%s261_s5] sm:$0xf] %v134_v27 }

</bundles_post_ra>
